<compile_context>
chip_gen: v5e
topology: v5e:2x2
jax: 0.10.0
libtpu: 0.0.40
codegen_flags: <defaults>
</compile_context>

<pallas_src>
import math
from functools import partial

import jax
import jax.numpy as jnp
from jax import lax
from jax.experimental import pallas as pl
from jax.experimental.pallas import tpu as pltpu

EMB = 64            # config['embedding_dim']
HID = 4 * EMB       # 256
PACK = 2            # 64-wide rows packed per 128-lane row
EMB_P = PACK * EMB  # 128  packed feature width
HID_P = PACK * HID  # 512  packed hidden width


def _round_up(x, m):
    return (x + m - 1) // m * m


def _choose_tm(M, tm_default):
    """Row tile: multiple of 16 (packed tile height multiple of 8), capped so that
    the parallel grid axis has >= 2 steps when M permits (keeps both v7x TCs busy)."""
    tm = max(16, _round_up(tm_default, 16))
    if M >= 2 * 16:
        tm = min(tm, max(16, (M // 2) // 16 * 16))
    return min(tm, _round_up(M, 16))


def pack_ffn_params(w1, b1, w2, b2):
    """Build the packed bf16 block-diagonal weights + duplicated f32 biases ONCE.
    Hoisted out of the forward call so it is not repeated per step."""
    w1d = jnp.zeros((EMB_P, HID_P), jnp.float32)
    w1d = w1d.at[:EMB, :HID].set(w1).at[EMB:, HID:].set(w1).astype(jnp.bfloat16)
    w2d = jnp.zeros((HID_P, EMB_P), jnp.float32)
    w2d = w2d.at[:HID, :EMB].set(w2).at[HID:, EMB:].set(w2).astype(jnp.bfloat16)
    b1d = jnp.concatenate([b1, b1]).reshape(1, HID_P).astype(jnp.float32)
    b2d = jnp.concatenate([b2, b2]).reshape(1, EMB_P).astype(jnp.float32)
    return (w1d, b1d, w2d, b2d)


def feedforward_kernel(x_ref, w1_ref, b1_ref, w2_ref, b2_ref, o_ref):
    # x_ref : (tm2, 128) f32   -- two 64-wide rows packed per 128-lane row
    # w1_ref: (128, 512) bf16  -- diag(W1, W1)
    # b1_ref: (1, 512)   f32   -- [b1 | b1]
    # w2_ref: (512, 128) bf16  -- diag(W2, W2)
    # b2_ref: (1, 128)   f32   -- [b2 | b2]
    # o_ref : (tm2, 128) f32
    x = x_ref[...].astype(jnp.bfloat16)                        # bf16 into the MXU

    # Single K=128 matmul -> full (tm2, 512) hidden, f32 accumulation.
    h = jnp.dot(x, w1_ref[...], preferred_element_type=jnp.float32)
    h = h + b1_ref[...]                                        # bias in f32
    h = jax.nn.gelu(h, approximate=True)                       # tanh GELU (EUP)

    # Single K=512 second matmul, add bias, write output tile exactly once.
    y = jnp.dot(h.astype(jnp.bfloat16), w2_ref[...],
                preferred_element_type=jnp.float32)
    o_ref[...] = (y + b2_ref[...]).astype(o_ref.dtype)

    # TODO(synk): training-mode dropout (pltpu.prng_seed / prng_random_bits) not implemented.


@partial(jax.jit, static_argnames=("tm",))
def feedforward(x, packed_params, *, tm=2048):
    """x: [B, T, EMB] float32.  packed_params = pack_ffn_params(w1, b1, w2, b2)."""
    w1d, b1d, w2d, b2d = packed_params
    B, T, E = x.shape
    assert E == EMB
    M = B * T

    tm = _choose_tm(M, tm)
    M_pad = _round_up(M, tm)
    tm2 = tm // PACK

    x2d = x.reshape(M, E)
    if M_pad != M:
        x2d = jnp.pad(x2d, ((0, M_pad - M), (0, 0)))
    # Free row-major repack: two 64-wide rows per 128-lane row (lane-dense slab).
    x_packed = x2d.reshape(M_pad // PACK, EMB_P)

    flops = 2 * M_pad * EMB_P * HID_P            # two matmuls on block-diag weights
    bytes_accessed = (x_packed.size * 4 + M_pad * EMB * 4
                      + w1d.size * 2 + w2d.size * 2 + (b1d.size + b2d.size) * 4)

    out = pl.pallas_call(
        feedforward_kernel,
        out_shape=jax.ShapeDtypeStruct((M_pad // PACK, EMB_P), x.dtype),
        grid_spec=pltpu.PrefetchScalarGridSpec(
            num_scalar_prefetch=0,
            grid=(M_pad // tm,),
            in_specs=[
                pl.BlockSpec((tm2, EMB_P), lambda i: (i, 0)),    # packed row tile
                pl.BlockSpec((EMB_P, HID_P), lambda i: (0, 0)),  # diag(W1,W1), resident
                pl.BlockSpec((1, HID_P), lambda i: (0, 0)),      # [b1|b1]
                pl.BlockSpec((HID_P, EMB_P), lambda i: (0, 0)),  # diag(W2,W2), resident
                pl.BlockSpec((1, EMB_P), lambda i: (0, 0)),      # [b2|b2]
            ],
            out_specs=pl.BlockSpec((tm2, EMB_P), lambda i: (i, 0)),
        ),
        compiler_params=pltpu.CompilerParams(
            dimension_semantics=("parallel",)),
        cost_estimate=pl.CostEstimate(
            flops=int(flops),
            transcendentals=int(M_pad * HID),
            bytes_accessed=int(bytes_accessed)),
    )(x_packed, w1d, b1d, w2d, b2d)

    # Unpack (free reshape), drop pad rows.
    return out.reshape(M_pad, EMB)[:M].reshape(B, T, EMB)


def _reference_exact(x, w1, b1, w2, b2):
    # f32, exact-erf GELU (PyTorch nn.GELU() default), eval-mode dropout.
    h = jnp.dot(x, w1) + b1
    h = 0.5 * h * (1.0 + lax.erf(h / math.sqrt(2.0)))
    return jnp.dot(h, w2) + b2


def _reference_matched(x, w1, b1, w2, b2):
    # Numerics-matched reference: bf16 matmul operands, f32 accumulation, tanh GELU.
    h = jnp.dot(x.astype(jnp.bfloat16), w1.astype(jnp.bfloat16),
                preferred_element_type=jnp.float32) + b1
    h = jax.nn.gelu(h, approximate=True)
    return jnp.dot(h.astype(jnp.bfloat16), w2.astype(jnp.bfloat16),
                   preferred_element_type=jnp.float32) + b2


if __name__ == "__main__":
    key = jax.random.PRNGKey(0)
    k_x, k_w1, k_b1, k_w2, k_b2 = jax.random.split(key, 5)

    # Deterministic parameter init (nn.Linear uniform(-1/sqrt(fan_in), 1/sqrt(fan_in)) scale).
    lim1 = 1.0 / math.sqrt(EMB)
    lim2 = 1.0 / math.sqrt(HID)
    w1 = jax.random.uniform(k_w1, (EMB, HID), jnp.float32, -lim1, lim1)
    b1 = jax.random.uniform(k_b1, (HID,), jnp.float32, -lim1, lim1)
    w2 = jax.random.uniform(k_w2, (HID, EMB), jnp.float32, -lim2, lim2)
    b2 = jax.random.uniform(k_b2, (EMB,), jnp.float32, -lim2, lim2)

    packed = pack_ffn_params(w1, b1, w2, b2)   # built once, reused across calls

    def check(x, tag):
        y = jax.block_until_ready(feedforward(x, packed))
        assert y.shape == x.shape
        y_match = _reference_matched(x, w1, b1, w2, b2)
        y_exact = _reference_exact(x, w1, b1, w2, b2)
        assert jnp.allclose(y, y_match, atol=1e-3, rtol=1e-3), f"mismatch vs matched ref ({tag})"
        assert jnp.allclose(y, y_exact, atol=3e-2, rtol=3e-2), f"mismatch vs exact ref ({tag})"

    # Case 1: tile-aligned small shape.
    x1 = jax.random.normal(k_x, (2, 8, EMB), dtype=jnp.float32)
    check(x1, "aligned")

    # Case 2: non-multiple-of-tile shape (exercises the padding path).
    x2 = jax.random.normal(jax.random.PRNGKey(1), (3, 7, EMB), dtype=jnp.float32)
    check(x2, "padded")

    # Case 3: context-sized shape (B=2, T=32) -> exercises the >=2-step parallel grid.
    x3 = jax.random.normal(jax.random.PRNGKey(2), (2, 32, EMB), dtype=jnp.float32)
    check(x3, "grid>=2")

    print("KERNEL_OK")
</pallas_src>

<mosaic_0001>
module attributes {stable_mosaic.version = 11 : i64} {
  func.func @feedforward_kernel(%arg0: i32, %arg1: memref<8x128xf32, #tpu.memory_space<vmem>>, %arg2: memref<128x512xbf16, #tpu.memory_space<vmem>>, %arg3: memref<1x512xf32, #tpu.memory_space<vmem>>, %arg4: memref<512x128xbf16, #tpu.memory_space<vmem>>, %arg5: memref<1x128xf32, #tpu.memory_space<vmem>>, %arg6: memref<8x128xf32, #tpu.memory_space<vmem>>) attributes {dimension_semantics = [#tpu.dimension_semantics<parallel>], iteration_bounds = array<i64: 1>, scalar_prefetch = 0 : i64, scratch_operands = 0 : i64, tpu.core_type = #tpu.core_type<tc>, window_params = [{transform_indices = @transform_0, window_bounds = array<i64: 8, 128>}, {pipeline_mode = #tpu.pipeline_mode<synchronous>, transform_indices = @transform_1, window_bounds = array<i64: 128, 512>}, {pipeline_mode = #tpu.pipeline_mode<synchronous>, transform_indices = @transform_2, window_bounds = array<i64: 1, 512>}, {pipeline_mode = #tpu.pipeline_mode<synchronous>, transform_indices = @transform_3, window_bounds = array<i64: 512, 128>}, {pipeline_mode = #tpu.pipeline_mode<synchronous>, transform_indices = @transform_4, window_bounds = array<i64: 1, 128>}, {transform_indices = @transform_5, window_bounds = array<i64: 8, 128>}]} {
    %c0 = arith.constant 0 : index
    %c0_0 = arith.constant 0 : index
    %0 = vector.load %arg1[%c0, %c0_0] : memref<8x128xf32, #tpu.memory_space<vmem>>, vector<8x128xf32>
    %1 = arith.truncf %0 : vector<8x128xf32> to vector<8x128xbf16>
    %c0_1 = arith.constant 0 : index
    %c0_2 = arith.constant 0 : index
    %2 = vector.load %arg2[%c0_1, %c0_2] : memref<128x512xbf16, #tpu.memory_space<vmem>>, vector<128x512xbf16>
    %cst = arith.constant dense<0.000000e+00> : vector<8x512xf32>
    %3 = tpu.matmul %1, %2, %cst {dimension_numbers = #tpu.dot_dimension_numbers<[1], [0], [0], [1], [0, 0, 1, 1], [], []>} : vector<8x128xbf16>, vector<128x512xbf16>, vector<8x512xf32> -> vector<8x512xf32>
    %c0_3 = arith.constant 0 : index
    %c0_4 = arith.constant 0 : index
    %4 = vector.load %arg3[%c0_3, %c0_4] : memref<1x512xf32, #tpu.memory_space<vmem>>, vector<1x512xf32>
    %5 = vector.broadcast %4 : vector<1x512xf32> to vector<8x512xf32>
    %6 = arith.addf %3, %5 : vector<8x512xf32>
    %7 = arith.mulf %6, %6 : vector<8x512xf32>
    %8 = arith.mulf %6, %7 : vector<8x512xf32>
    %cst_5 = arith.constant 4.471500e-02 : f32
    %9 = vector.broadcast %cst_5 : f32 to vector<8x512xf32>
    %10 = arith.mulf %9, %8 : vector<8x512xf32>
    %11 = arith.addf %6, %10 : vector<8x512xf32>
    %cst_6 = arith.constant 0.797884583 : f32
    %12 = vector.broadcast %cst_6 : f32 to vector<8x512xf32>
    %13 = arith.mulf %12, %11 : vector<8x512xf32>
    %14 = math.tanh %13 : vector<8x512xf32>
    %cst_7 = arith.constant 1.000000e+00 : f32
    %15 = vector.broadcast %cst_7 : f32 to vector<8x512xf32>
    %16 = arith.addf %15, %14 : vector<8x512xf32>
    %cst_8 = arith.constant 5.000000e-01 : f32
    %17 = vector.broadcast %cst_8 : f32 to vector<8x512xf32>
    %18 = arith.mulf %17, %16 : vector<8x512xf32>
    %19 = arith.mulf %6, %18 : vector<8x512xf32>
    %20 = arith.truncf %19 : vector<8x512xf32> to vector<8x512xbf16>
    %c0_9 = arith.constant 0 : index
    %c0_10 = arith.constant 0 : index
    %21 = vector.load %arg4[%c0_9, %c0_10] : memref<512x128xbf16, #tpu.memory_space<vmem>>, vector<512x128xbf16>
    %cst_11 = arith.constant dense<0.000000e+00> : vector<8x128xf32>
    %22 = tpu.matmul %20, %21, %cst_11 {dimension_numbers = #tpu.dot_dimension_numbers<[1], [0], [0], [1], [0, 0, 1, 1], [], []>} : vector<8x512xbf16>, vector<512x128xbf16>, vector<8x128xf32> -> vector<8x128xf32>
    %c0_12 = arith.constant 0 : index
    %c0_13 = arith.constant 0 : index
    %23 = vector.load %arg5[%c0_12, %c0_13] : memref<1x128xf32, #tpu.memory_space<vmem>>, vector<1x128xf32>
    %24 = vector.broadcast %23 : vector<1x128xf32> to vector<8x128xf32>
    %25 = arith.addf %22, %24 : vector<8x128xf32>
    %c0_14 = arith.constant 0 : index
    %c0_15 = arith.constant 0 : index
    %26 = vector.load %arg6[%c0_14, %c0_15] : memref<8x128xf32, #tpu.memory_space<vmem>>, vector<8x128xf32>
    tpu.vector_store %arg6[%c0_14, %c0_15], %25 {strides = array<i32>} : memref<8x128xf32, #tpu.memory_space<vmem>>, vector<8x128xf32>,
    return
  }
  func.func @transform_0(%arg0: i32) -> (i32, i32) {
    %c0_i32 = arith.constant 0 : i32
    %c0_i32_0 = arith.constant 0 : i32
    return %arg0, %c0_i32 : i32, i32
  }
  func.func @transform_1(%arg0: i32) -> (i32, i32) {
    %c0_i32 = arith.constant 0 : i32
    %c0_i32_0 = arith.constant 0 : i32
    %c0_i32_1 = arith.constant 0 : i32
    return %c0_i32, %c0_i32_0 : i32, i32
  }
  func.func @transform_2(%arg0: i32) -> (i32, i32) {
    %c0_i32 = arith.constant 0 : i32
    %c0_i32_0 = arith.constant 0 : i32
    %c0_i32_1 = arith.constant 0 : i32
    return %c0_i32, %c0_i32_0 : i32, i32
  }
  func.func @transform_3(%arg0: i32) -> (i32, i32) {
    %c0_i32 = arith.constant 0 : i32
    %c0_i32_0 = arith.constant 0 : i32
    %c0_i32_1 = arith.constant 0 : i32
    return %c0_i32, %c0_i32_0 : i32, i32
  }
  func.func @transform_4(%arg0: i32) -> (i32, i32) {
    %c0_i32 = arith.constant 0 : i32
    %c0_i32_0 = arith.constant 0 : i32
    %c0_i32_1 = arith.constant 0 : i32
    return %c0_i32, %c0_i32_0 : i32, i32
  }
  func.func @transform_5(%arg0: i32) -> (i32, i32) {
    %c0_i32 = arith.constant 0 : i32
    %c0_i32_0 = arith.constant 0 : i32
    return %arg0, %c0_i32 : i32, i32
  }
}

</mosaic_0001>

<bundles_post_ra>
// kernel: feedforward.1
= control target key start
LH: loop header
LB: loop body
LE: loop exit
PB: predicated region body
PF: predicated region fallthrough
CT: control target
= control target key end

     0   :  { %10 = vsyncpa [#allocation3], 0  ;;  %s1108_s0 = inlined_call_operand.vmem [shape: f32[8,128], index: 0, kind: input, shape index: {}]   ;;  %s1109_s1 = inlined_call_operand.hbm [shape: bf16[128,512], index: 1, kind: input, shape index: {}]   ;;  %s1110_s2 = inlined_call_operand.vmem [shape: f32[1,512], index: 2, kind: input, shape index: {}]   ;;  %s1111_s3 = inlined_call_operand.hbm [shape: bf16[512,128], index: 3, kind: input, shape index: {}]   ;;  %s1112_s4 = inlined_call_operand.vmem [shape: f32[1,128], index: 4, kind: input, shape index: {}]   ;;  %s1113_s5 = inlined_call_operand.vmem [shape: f32[8,128], index: 5, kind: output, shape index: {}]  }
   0x1   :  { %s18_s20 = sshll.u32 %s1109_s1, 4  ;;  %s19_s20 = int_to_ptr.hbm [resolvable:$true] %s18_s20 }
   0x2   :  { %11 = vsyncpa [#allocation5], 0  ;;  %s1054_s21 = smov [#allocation2]   ;;  %s33_s25 = sshll.u32 %s1111_s3, 4  ;;  %s34_s25 = int_to_ptr.hbm [resolvable:$true] %s33_s25 }
   0x3   :  { %s20_s22 = sshll.u32 %s1054_s21, 4  ;;  %s1055_s26 = smov 256   ;;  %s21_s22 = int_to_ptr.vmem [resolvable:$true] %s20_s22 }
   0x4   :  { %s1056_s27 = smov 16   ;;  %s1057_s28 = smov [#allocation4]  }
   0x5   :  { %26 = dma.hbm_to_vmem [thread:$0]  %s19_s20, 4096, %s21_s22, [#allocation3], %s1055_s26, %s1055_s26, %s1056_s27  }
   0x6   :  { %s35_s29 = sshll.u32 %s1057_s28, 4  ;;  %s1058_s30 = smov 64   ;;  %s36_s29 = int_to_ptr.vmem [resolvable:$true] %s35_s29 }
   0x7   :  { %s1059_s6 = smov 4  }
   0x8   :  { %41 = dma.hbm_to_vmem [thread:$0]  %s34_s25, 4096, %s36_s29, [#allocation5], %s1058_s30, %s1058_s30, %s1059_s6  }
   0x9   :  { %1050 = dma.done.wait [#allocation3], 4096  }
   0xa   :  { %1051 = vsyncadd [#allocation3], 4294963200 }
   0xb   :  { %1052 = dma.done.wait [#allocation5], 4096  }
   0xc   :  { %1053 = vsyncadd [#allocation5], 4294963200  ;;  %v781_v0 = vld [vmem:[#allocation2 + $0xe0] sm:$0xf]  ;;  %v953_v1 = vld [vmem:[#allocation2 + $0xec] sm:$0xf0] }
   0xd   :  { %v951_v2 = vld [vmem:[#allocation2 + $0xe4] sm:$0xf]  ;;  %v782_v3 = vor.u32 %v953_v1, %v781_v0  ;;  %v783_v4 = vld [vmem:[#allocation2 + $0xf0] sm:$0xf0]  ;;  %v789_v5 = vld [vmem:[#allocation2 + $0xe8] sm:$0xf] }
   0xe   :  { %v954_v6 = vld [vmem:[#allocation2 + $0xf4] sm:$0xf0]  ;;  %v786_v7 = vor.u32 %v951_v2, %v783_v4  ;;  %v952_v9 = vld [vmem:[#allocation2 + $0xec] sm:$0xf]  ;;  %v791_v10 = vld [vmem:[#allocation2 + $0xf8] sm:$0xf0] }
   0xf   :  { %v790_v8 = vor.u32 %v954_v6, %v789_v5  ;;  %v765_v11 = vld [vmem:[#allocation2 + $0xc0] sm:$0xf]  ;;  %256 = vmatpush.bf16.msra.mxu0 %v782_v3  ;;  %v794_v12 = vor.u32 %v952_v9, %v791_v10  ;;  %v949_v13 = vld [vmem:[#allocation2 + $0xcc] sm:$0xf0]  ;;  %v947_v14 = vld [vmem:[#allocation2 + $0xc4] sm:$0xf] }
  0x10   :  { %v767_v15 = vld [vmem:[#allocation2 + $0xd0] sm:$0xf0]  ;;  %269 = vmatpush.bf16.msra.mxu1 %v786_v7  ;;  %v766_v16 = vor.u32 %v949_v13, %v765_v11  ;;  %v773_v18 = vld [vmem:[#allocation2 + $0xc8] sm:$0xf]  ;;  %v950_v19 = vld [vmem:[#allocation2 + $0xd4] sm:$0xf0] }
  0x11   :  { %282 = vmatpush.bf16.msra.mxu2 %v790_v8  ;;  %v770_v17 = vor.u32 %v947_v14, %v767_v15  ;;  %v948_v20 = vld [vmem:[#allocation2 + $0xcc] sm:$0xf]  ;;  %295 = vmatpush.bf16.msra.mxu3 %v794_v12  ;;  %v774_v21 = vor.u32 %v950_v19, %v773_v18  ;;  %v775_v22 = vld [vmem:[#allocation2 + $0xd8] sm:$0xf0]  ;;  %v749_v23 = vld [vmem:[#allocation2 + $0xa0] sm:$0xf] }
  0x12   :  { %v945_v24 = vld [vmem:[#allocation2 + $0xac] sm:$0xf0]  ;;  %v778_v25 = vor.u32 %v948_v20, %v775_v22  ;;  %v943_v26 = vld [vmem:[#allocation2 + $0xa4] sm:$0xf]  ;;  %v751_v27 = vld [vmem:[#allocation2 + $0xb0] sm:$0xf0] }
  0x13   :  { %v757_v28 = vld [vmem:[#allocation2 + $0xa8] sm:$0xf]  ;;  %257 = vmatpush.bf16.msra.mxu0 %v766_v16  ;;  %v750_v29 = vor.u32 %v945_v24, %v749_v23  ;;  %v946_v30 = vld [vmem:[#allocation2 + $0xb4] sm:$0xf0]  ;;  %v944_v31 = vld [vmem:[#allocation2 + $0xac] sm:$0xf]  ;;  %v754_v33 = vor.u32 %v943_v26, %v751_v27 }
  0x14   :  { %v759_v32 = vld [vmem:[#allocation2 + $0xb8] sm:$0xf0]  ;;  %270 = vmatpush.bf16.msra.mxu1 %v770_v17  ;;  %v758_v34 = vor.u32 %v946_v30, %v757_v28  ;;  %v733_v35 = vld [vmem:[#allocation2 + $0x80] sm:$0xf]  ;;  %v941_v36 = vld [vmem:[#allocation2 + $0x8c] sm:$0xf0] }
  0x15   :  { %283 = vmatpush.bf16.msra.mxu2 %v774_v21  ;;  %v939_v37 = vld [vmem:[#allocation2 + $0x84] sm:$0xf]  ;;  %296 = vmatpush.bf16.msra.mxu3 %v778_v25  ;;  %v762_v38 = vor.u32 %v944_v31, %v759_v32  ;;  %v735_v39 = vld [vmem:[#allocation2 + $0x90] sm:$0xf0]  ;;  %v741_v40 = vld [vmem:[#allocation2 + $0x88] sm:$0xf]  ;;  %v734_v44 = vor.u32 %v941_v36, %v733_v35 }
  0x16   :  { %v942_v41 = vld [vmem:[#allocation2 + $0x94] sm:$0xf0]  ;;  %v940_v42 = vld [vmem:[#allocation2 + $0x8c] sm:$0xf]  ;;  %v743_v43 = vld [vmem:[#allocation2 + $0x98] sm:$0xf0]  ;;  %v738_v45 = vor.u32 %v939_v37, %v735_v39 }
  0x17   :  { %258 = vmatpush.bf16.msra.mxu0 %v750_v29  ;;  %v742_v46 = vor.u32 %v942_v41, %v741_v40  ;;  %v717_v47 = vld [vmem:[#allocation2 + $0x60] sm:$0xf]  ;;  %v937_v48 = vld [vmem:[#allocation2 + $0x6c] sm:$0xf0]  ;;  %v935_v49 = vld [vmem:[#allocation2 + $0x64] sm:$0xf]  ;;  %v746_v50 = vor.u32 %v940_v42, %v743_v43 }
  0x18   :  { %271 = vmatpush.bf16.msra.mxu1 %v754_v33  ;;  %v719_v51 = vld [vmem:[#allocation2 + $0x70] sm:$0xf0]  ;;  %v725_v52 = vld [vmem:[#allocation2 + $0x68] sm:$0xf]  ;;  %v938_v53 = vld [vmem:[#allocation2 + $0x74] sm:$0xf0]  ;;  %v718_v56 = vor.u32 %v937_v48, %v717_v47 }
  0x19   :  { %284 = vmatpush.bf16.msra.mxu2 %v758_v34  ;;  %297 = vmatpush.bf16.msra.mxu3 %v762_v38  ;;  %v936_v54 = vld [vmem:[#allocation2 + $0x6c] sm:$0xf]  ;;  %v727_v55 = vld [vmem:[#allocation2 + $0x78] sm:$0xf0]  ;;  %v722_v57 = vor.u32 %v935_v49, %v719_v51  ;;  %v726_v58 = vor.u32 %v938_v53, %v725_v52  ;;  %v701_v59 = vld [vmem:[#allocation2 + $0x40] sm:$0xf] }
  0x1a   :  { %v933_v60 = vld [vmem:[#allocation2 + $0x4c] sm:$0xf0]  ;;  %v931_v61 = vld [vmem:[#allocation2 + $0x44] sm:$0xf]  ;;  %v730_v62 = vor.u32 %v936_v54, %v727_v55  ;;  %v703_v63 = vld [vmem:[#allocation2 + $0x50] sm:$0xf0] }
  0x1b   :  { %259 = vmatpush.bf16.msra.mxu0 %v734_v44  ;;  %v709_v0 = vld [vmem:[#allocation2 + $0x48] sm:$0xf]  ;;  %v934_v1 = vld [vmem:[#allocation2 + $0x54] sm:$0xf0]  ;;  %v932_v2 = vld [vmem:[#allocation2 + $0x4c] sm:$0xf]  ;;  %v702_v4 = vor.u32 %v933_v60, %v701_v59  ;;  %v706_v5 = vor.u32 %v931_v61, %v703_v63 }
  0x1c   :  { %272 = vmatpush.bf16.msra.mxu1 %v738_v45  ;;  %v711_v3 = vld [vmem:[#allocation2 + $0x58] sm:$0xf0]  ;;  %v710_v6 = vor.u32 %v934_v1, %v709_v0  ;;  %v685_v7 = vld [vmem:[#allocation2 + $0x20] sm:$0xf]  ;;  %v929_v8 = vld [vmem:[#allocation2 + $0x2c] sm:$0xf0] }
  0x1d   :  { %285 = vmatpush.bf16.msra.mxu2 %v742_v46  ;;  %298 = vmatpush.bf16.msra.mxu3 %v746_v50  ;;  %v927_v9 = vld [vmem:[#allocation2 + $0x24] sm:$0xf]  ;;  %v714_v10 = vor.u32 %v932_v2, %v711_v3  ;;  %v687_v11 = vld [vmem:[#allocation2 + $0x30] sm:$0xf0]  ;;  %v693_v12 = vld [vmem:[#allocation2 + $0x28] sm:$0xf]  ;;  %v686_v16 = vor.u32 %v929_v8, %v685_v7 }
  0x1e   :  { %v930_v13 = vld [vmem:[#allocation2 + $0x34] sm:$0xf0]  ;;  %v928_v14 = vld [vmem:[#allocation2 + $0x2c] sm:$0xf]  ;;  %v695_v15 = vld [vmem:[#allocation2 + $0x38] sm:$0xf0]  ;;  %v690_v17 = vor.u32 %v927_v9, %v687_v11 }
  0x1f   :  { %260 = vmatpush.bf16.msra.mxu0 %v718_v56  ;;  %v694_v18 = vor.u32 %v930_v13, %v693_v12  ;;  %v669_v19 = vld [vmem:[#allocation2] sm:$0xf]  ;;  %v925_v20 = vld [vmem:[#allocation2 + $0xc] sm:$0xf0]  ;;  %v923_v21 = vld [vmem:[#allocation2 + $0x4] sm:$0xf]  ;;  %v698_v22 = vor.u32 %v928_v14, %v695_v15 }
  0x20   :  { %273 = vmatpush.bf16.msra.mxu1 %v722_v57  ;;  %v671_v23 = vld [vmem:[#allocation2 + $0x10] sm:$0xf0]  ;;  %v677_v24 = vld [vmem:[#allocation2 + $0x8] sm:$0xf]  ;;  %v926_v25 = vld [vmem:[#allocation2 + $0x14] sm:$0xf0]  ;;  %v670_v28 = vor.u32 %v925_v20, %v669_v19 }
  0x21   :  { %286 = vmatpush.bf16.msra.mxu2 %v726_v58  ;;  %299 = vmatpush.bf16.msra.mxu3 %v730_v62  ;;  %v924_v26 = vld [vmem:[#allocation2 + $0xc] sm:$0xf]  ;;  %v679_v27 = vld [vmem:[#allocation2 + $0x18] sm:$0xf0]  ;;  %v52_v29 = vld [vmem:[%s1108_s0] sm:$0xff]  ;;  %v674_v30 = vor.u32 %v923_v21, %v671_v23  ;;  %v678_v31 = vor.u32 %v926_v25, %v677_v24 }
  0x22   :  { %v682_v32 = vor.u32 %v924_v26, %v679_v27  ;;  %v962_v33 = vld [vmem:[#allocation4 + $0x38] sm:$0xff]  ;;  %v53_v34 = vpack.c.bf16 %v52_v29, %v52_v29  ;;  %v961_v36 = vld [vmem:[#allocation4 + $0x30] sm:$0xff]  ;;  %v960_v40 = vld [vmem:[#allocation4 + $0x28] sm:$0xff] }
  0x23   :  { %261 = vmatpush.bf16.msra.mxu0 %v702_v4  ;;  %v970_v35 = vld [vmem:[#allocation4 + $0x78] sm:$0xff]  ;;  %v969_v37 = vld [vmem:[#allocation4 + $0x70] sm:$0xff]  ;;  %v968_v41 = vld [vmem:[#allocation4 + $0x68] sm:$0xff] }
  0x24   :  { %274 = vmatpush.bf16.msra.mxu1 %v706_v5  ;;  %v978_v38 = vld [vmem:[#allocation4 + $0xb8] sm:$0xff]  ;;  %v977_v42 = vld [vmem:[#allocation4 + $0xb0] sm:$0xff]  ;;  %v959_v44 = vld [vmem:[#allocation4 + $0x20] sm:$0xff] }
  0x25   :  { %287 = vmatpush.bf16.msra.mxu2 %v710_v6  ;;  %300 = vmatpush.bf16.msra.mxu3 %v714_v10  ;;  %v986_v39 = vld [vmem:[#allocation4 + $0xf8] sm:$0xff]  ;;  %v985_v43 = vld [vmem:[#allocation4 + $0xf0] sm:$0xff]  ;;  %v967_v45 = vld [vmem:[#allocation4 + $0x60] sm:$0xff] }
  0x26   :  { %v976_v46 = vld [vmem:[#allocation4 + $0xa8] sm:$0xff]  ;;  %v958_v48 = vld [vmem:[#allocation4 + $0x18] sm:$0xff]  ;;  %v975_v50 = vld [vmem:[#allocation4 + $0xa0] sm:$0xff] }
  0x27   :  { %262 = vmatpush.bf16.msra.mxu0 %v686_v16  ;;  %v984_v47 = vld [vmem:[#allocation4 + $0xe8] sm:$0xff]  ;;  %v966_v49 = vld [vmem:[#allocation4 + $0x58] sm:$0xff]  ;;  %v983_v51 = vld [vmem:[#allocation4 + $0xe0] sm:$0xff] }
  0x28   :  { %275 = vmatpush.bf16.msra.mxu1 %v690_v17  ;;  %v957_v52 = vld [vmem:[#allocation4 + $0x10] sm:$0xff]  ;;  %v974_v54 = vld [vmem:[#allocation4 + $0x98] sm:$0xff]  ;;  %v956_v56 = vld [vmem:[#allocation4 + $0x8] sm:$0xff] }
  0x29   :  { %288 = vmatpush.bf16.msra.mxu2 %v694_v18  ;;  %301 = vmatpush.bf16.msra.mxu3 %v698_v22  ;;  %v965_v53 = vld [vmem:[#allocation4 + $0x50] sm:$0xff]  ;;  %v982_v55 = vld [vmem:[#allocation4 + $0xd8] sm:$0xff]  ;;  %v964_v57 = vld [vmem:[#allocation4 + $0x48] sm:$0xff] }
  0x2a   :  { %v973_v58 = vld [vmem:[#allocation4 + $0x90] sm:$0xff]  ;;  %v955_v60 = vld [vmem:[#allocation4] sm:$0xff]  ;;  %v972_v62 = vld [vmem:[#allocation4 + $0x88] sm:$0xff] }
  0x2b   :  { %263 = vmatpush.bf16.msra.mxu0 %v670_v28  ;;  %v981_v59 = vld [vmem:[#allocation4 + $0xd0] sm:$0xff]  ;;  %v963_v61 = vld [vmem:[#allocation4 + $0x40] sm:$0xff]  ;;  %v980_v63 = vld [vmem:[#allocation4 + $0xc8] sm:$0xff] }
  0x2c   :  { %276 = vmatpush.bf16.msra.mxu1 %v674_v30  ;;  %v86_v0 = vld [vmem:[%s1110_s2] sm:$0xf] }
  0x2d   :  { %289 = vmatpush.bf16.msra.mxu2 %v678_v31  ;;  %302 = vmatpush.bf16.msra.mxu3 %v682_v32  ;;  %v88_v1 = vperm.slane %v86_v0, 0  ;;  %v971_v2 = vld [vmem:[#allocation4 + $0x80] sm:$0xff]  ;;  %v89_v4 = vperm.slane %v86_v0, 1  ;;  %v90_v11 = vperm.slane %v86_v0, 2  ;;  %v91_v13 = vperm.slane %v86_v0, 3 }
  0x2e   :  { %264 = vmatmul.bf16.vlgmr.msra.gmra.mxu0 %v53_v34  ;;  %v979_v3 = vld [vmem:[#allocation4 + $0xc0] sm:$0xff] }
  0x2f   :  { %608 = vmatpush.bf16.msrb.mxu0 %v962_v33  ;;  %277 = vmatmul.bf16.vlgmr.msra.gmra.mxu1 %v53_v34 }
  0x30   :  { %621 = vmatpush.bf16.msrb.mxu1 %v970_v35  ;;  %290 = vmatmul.bf16.vlgmr.msra.gmra.mxu2 %v53_v34 }
  0x31   :  { %303 = vmatmul.bf16.vlgmr.msra.gmra.mxu3 %v53_v34  ;;  %634 = vmatpush.bf16.msrb.mxu2 %v978_v38 }
  0x32   :  { %647 = vmatpush.bf16.msrb.mxu3 %v986_v39 }
  0x33   :  { %609 = vmatpush.bf16.msrb.mxu0 %v961_v36 }
  0x34   :  { %622 = vmatpush.bf16.msrb.mxu1 %v969_v37 }
  0x35   :  { %635 = vmatpush.bf16.msrb.mxu2 %v977_v42 }
  0x36   :  { %648 = vmatpush.bf16.msrb.mxu3 %v985_v43 }
  0x37   :  { %610 = vmatpush.bf16.msrb.mxu0 %v960_v40 }
  0x38   :  { %623 = vmatpush.bf16.msrb.mxu1 %v968_v41 }
  0x39   :  { %636 = vmatpush.bf16.msrb.mxu2 %v976_v46 }
  0x3a   :  { %649 = vmatpush.bf16.msrb.mxu3 %v984_v47 }
  0x3b   :  { %611 = vmatpush.bf16.msrb.mxu0 %v959_v44 }
  0x3c   :  { %624 = vmatpush.bf16.msrb.mxu1 %v967_v45 }
  0x3d   :  { %637 = vmatpush.bf16.msrb.mxu2 %v975_v50 }
  0x3e   :  { %650 = vmatpush.bf16.msrb.mxu3 %v983_v51 }
  0x3f   :  { %612 = vmatpush.bf16.msrb.mxu0 %v958_v48 }
  0x40   :  { %625 = vmatpush.bf16.msrb.mxu1 %v966_v49 }
  0x41   :  { %638 = vmatpush.bf16.msrb.mxu2 %v974_v54 }
  0x42   :  { %651 = vmatpush.bf16.msrb.mxu3 %v982_v55 }
  0x43   :  { %613 = vmatpush.bf16.msrb.mxu0 %v957_v52 }
  0x44   :  { %626 = vmatpush.bf16.msrb.mxu1 %v965_v53 }
  0x45   :  { %639 = vmatpush.bf16.msrb.mxu2 %v973_v58 }
  0x46   :  { %652 = vmatpush.bf16.msrb.mxu3 %v981_v59 }
  0x47   :  { %614 = vmatpush.bf16.msrb.mxu0 %v956_v56 }
  0x48   :  { %627 = vmatpush.bf16.msrb.mxu1 %v964_v57 }
  0x49   :  { %640 = vmatpush.bf16.msrb.mxu2 %v972_v62 }
  0x4a   :  { %653 = vmatpush.bf16.msrb.mxu3 %v980_v63 }
  0x4b   :  { %615 = vmatpush.bf16.msrb.mxu0 %v955_v60 }
  0x4c   :  { %628 = vmatpush.bf16.msrb.mxu1 %v963_v61  ;;  %v993_v61 = vld [vmem:[%s1112_s4] ss:$0 sm:$0xff] }
  0x4d   :  { %641 = vmatpush.bf16.msrb.mxu2 %v971_v2 }
  0x4e   :  { %654 = vmatpush.bf16.msrb.mxu3 %v979_v3 }
  0xab   :  { %v265_v5 = vpop.f32.mrf.mxu0 }
  0xac   :  { %v266_v6 = vadd.f32 %v265_v5, %v88_v1  ;;  %v278_v7 = vpop.f32.mrf.mxu1 }
  0xad   :  { %v279_v8 = vadd.f32 %v278_v7, %v89_v4 }
  0xae   :  { %v308_v9 = vmul.f32 %v266_v6, %v266_v6 }
  0xaf   :  { %v309_v10 = vmul.f32 %v279_v8, %v279_v8 }
  0xb0   :  { %v312_v12 = vmul.f32 %v308_v9, %v266_v6 }
  0xb1   :  { %v313_v14 = vmul.f32 %v309_v10, %v279_v8 }
  0xb2   :  { %v316_v15 = vmul.f32 0.044715, %v312_v12 }
  0xb3   :  { %v291_v16 = vpop.f32.mrf.mxu2  ;;  %v317_v17 = vmul.f32 0.044715, %v313_v14  ;;  %v267_v20 = vpop.f32.mrf.mxu0 }
  0xb4   :  { %v292_v18 = vadd.f32 %v291_v16, %v90_v11  ;;  %v304_v19 = vpop.f32.mrf.mxu3  ;;  %v320_v21 = vadd.f32 %v316_v15, %v266_v6  ;;  %v280_v23 = vpop.f32.mrf.mxu1 }
  0xb5   :  { %v305_v22 = vadd.f32 %v304_v19, %v91_v13  ;;  %v321_v24 = vadd.f32 %v317_v17, %v279_v8 }
  0xb6   :  { %v310_v25 = vmul.f32 %v292_v18, %v292_v18  ;;  %v324_v26 = vmul.f32 0.7978846, %v320_v21 }
  0xb7   :  { %v311_v27 = vmul.f32 %v305_v22, %v305_v22  ;;  %v325_v28 = vmul.f32 0.7978846, %v321_v24 }
  0xb8   :  { %v314_v29 = vmul.f32 %v310_v25, %v292_v18  ;;  %994 = vtanh.f32 %v324_v26 }
  0xb9   :  { %v315_v30 = vmul.f32 %v311_v27, %v305_v22  ;;  %996 = vtanh.f32 %v325_v28 }
  0xba   :  { %v318_v31 = vmul.f32 0.044715, %v314_v29 }
  0xbb   :  { %v319_v32 = vmul.f32 0.044715, %v315_v30  ;;  %v293_v33 = vpop.f32.mrf.mxu2 }
  0xbc   :  { %v322_v34 = vadd.f32 %v318_v31, %v292_v18  ;;  %v306_v35 = vpop.f32.mrf.mxu3 }
  0xbd   :  { %v323_v36 = vadd.f32 %v319_v32, %v305_v22 }
  0xbe   :  { %v326_v37 = vmul.f32 0.7978846, %v322_v34  ;;  %v995_v38 = vpop.eup %994 }
  0xbf   :  { %v327_v39 = vmul.f32 0.7978846, %v323_v36  ;;  %v997_v40 = vpop.eup %996  ;;  %v332_v41 = vadd.f32 1.0, %v995_v38 }
  0xc0   :  { %998 = vtanh.f32 %v326_v37  ;;  %v333_v42 = vadd.f32 1.0, %v997_v40 }
  0xc1   :  { %1000 = vtanh.f32 %v327_v39  ;;  %v336_v43 = vmul.f32 0.5, %v332_v41 }
  0xc2   :  { %v337_v44 = vmul.f32 0.5, %v333_v42 }
  0xc3   :  { %v340_v45 = vmul.f32 %v336_v43, %v266_v6 }
  0xc4   :  { %v341_v46 = vmul.f32 %v337_v44, %v279_v8 }
  0xc5   :  { %v344_v48 = vpack.c.bf16 %v340_v45, %v340_v45 }
  0xc6   :  { %v999_v47 = vpop.eup %998  ;;  %v345_v50 = vpack.c.bf16 %v341_v46, %v341_v46 }
  0xc7   :  { %v1001_v49 = vpop.eup %1000  ;;  %v334_v51 = vadd.f32 1.0, %v999_v47  ;;  %616 = vmatmul.bf16.vlgmr.msrb.gmra.mxu0 %v344_v48 }
  0xc8   :  { %v335_v52 = vadd.f32 1.0, %v1001_v49  ;;  %629 = vmatmul.bf16.vlgmr.msrb.gmra.mxu1 %v345_v50 }
  0xc9   :  { %v338_v53 = vmul.f32 0.5, %v334_v51 }
  0xca   :  { %v339_v54 = vmul.f32 0.5, %v335_v52 }
  0xcb   :  { %v342_v55 = vmul.f32 %v338_v53, %v292_v18 }
  0xcc   :  { %v343_v56 = vmul.f32 %v339_v54, %v305_v22 }
  0xcd   :  { %v346_v57 = vpack.c.bf16 %v342_v55, %v342_v55 }
  0xce   :  { %v347_v58 = vpack.c.bf16 %v343_v56, %v343_v56 }
  0xcf   :  { %642 = vmatmul.bf16.vlgmr.msrb.gmra.mxu2 %v346_v57 }
  0xd0   :  { %655 = vmatmul.bf16.vlgmr.msrb.gmra.mxu3 %v347_v58 }
 0x144   :  { %v617_v59 = vpop.f32.mrf.mxu0 }
 0x145   :  { %v630_v60 = vpop.f32.mrf.mxu1  ;;  %v618_v62 = vadd.f32 %v993_v61, %v617_v59 }
 0x147   :  { %v631_v1 = vadd.f32 %v630_v60, %v618_v62 }
 0x14c   :  { %v619_v63 = vpop.f32.mrf.mxu0 }
 0x14d   :  { %v632_v0 = vpop.f32.mrf.mxu1 }
 0x152   :  { %v643_v2 = vpop.f32.mrf.mxu2 }
 0x153   :  { %v644_v3 = vadd.f32 %v643_v2, %v631_v1  ;;  %v656_v4 = vpop.f32.mrf.mxu3 }
 0x155   :  { %v657_v5 = vadd.f32 %v656_v4, %v644_v3 }
 0x157   :  { %660 = vst [vmem:[%s1113_s5] sm:$0xff] %v657_v5 }
 0x15a   :  { %v645_v6 = vpop.f32.mrf.mxu2 }
 0x15b   :  { %v658_v7 = vpop.f32.mrf.mxu3 }
 0x15c   :  { %665 = vsyncpa [#allocation3], 1 }
 0x15d   :  { %666 = vsyncpa [#allocation5], 1 }

</bundles_post_ra>
